<compile_context>
chip_gen: v5e
topology: v5e:2x2
jax: 0.10.0
libtpu: 0.0.40
codegen_flags: <defaults>
</compile_context>

<pallas_src>
import math
import numpy as np

import jax
import jax.numpy as jnp
from jax.experimental import pallas as pl
from jax.experimental.pallas import tpu as pltpu


# ----------------------------- configuration --------------------------------
HIDDEN_SIZE = 32
MULTI_HEAD = 4
D_K = HIDDEN_SIZE // MULTI_HEAD   # 8
BATCH = 2
SEQ = 8
MASK_FILL = -1000000000.0
# TODO(synk): nn.Dropout on the attention map is identity at inference time;
#             training-mode dropout is not implemented here.

# Row offsets inside the packed weight slab (width = HIDDEN_SIZE lanes).
_H = HIDDEN_SIZE
_OFF_WQ, _OFF_WK, _OFF_WV, _OFF_WM = 0 * _H, 1 * _H, 2 * _H, 3 * _H
_OFF_WX, _OFF_WY, _OFF_WG = 4 * _H, 5 * _H, 6 * _H
_OFF_EK, _OFF_EQ = 7 * _H, 8 * _H
_OFF_B = 9 * _H                    # bias rows: bq, bk, bv, bm, bx, by, bg


# -------------------- one-time host-side weight packing -----------------------
def pack_mhatt_weights(params):
    """Pack all constants into one (rows, H) f32 slab. Runs ONCE, off hot path."""
    (wq, bq, wk, bk, wv, bv, wx, bx, wy, by, wg, bg, wm, bm) = params
    H, NH, D = HIDDEN_SIZE, MULTI_HEAD, D_K
    f32 = jnp.float32

    eye = jnp.eye(NH, dtype=f32)
    wqT, wkT, wvT, wmT = wq.T, wk.T, wv.T, wm.T          # (H, H) each
    wxT_bd = jnp.kron(eye, wx.T)                         # (H, H) block-diagonal
    wyT_bd = jnp.kron(eye, wy.T)                         # (H, H) block-diagonal
    wgT_full = jnp.zeros((H, H), f32).at[:, :2 * NH].set(jnp.kron(eye, wg.T))

    # Gate-expansion matrices (zero-padded to (H, H) so no lane slicing is
    # needed in-kernel).  The 1/sqrt(d_k) score scale is folded into eq.
    scale = 1.0 / math.sqrt(D)
    ek_np = np.zeros((H, H), np.float32)
    eq_np = np.zeros((H, H), np.float32)
    for h in range(NH):
        ek_np[2 * h, h * D:(h + 1) * D] = 1.0            # k-gate of head h
        eq_np[2 * h + 1, h * D:(h + 1) * D] = scale      # q-gate of head h
    ek = jnp.asarray(ek_np)
    eq = jnp.asarray(eq_np)

    def bias_row(b):
        b = jnp.asarray(b, f32).reshape(1, -1)
        return jnp.pad(b, ((0, 0), (0, H - b.shape[1])))

    pieces = [wqT, wkT, wvT, wmT, wxT_bd, wyT_bd, wgT_full, ek, eq,
              bias_row(bq), bias_row(bk), bias_row(bv), bias_row(bm),
              bias_row(jnp.tile(bx, (1, NH))),
              bias_row(jnp.tile(by, (1, NH))),
              bias_row(jnp.tile(bg, (1, NH)))]
    slab = jnp.concatenate([p.astype(f32) for p in pieces], axis=0)
    pad = (-slab.shape[0]) % 8
    if pad:
        slab = jnp.pad(slab, ((0, pad), (0, 0)))
    return jax.device_put(slab)


# --------------------------------- kernel -------------------------------------
def mhatt_kernel(data_ref, w_ref, out_ref):
    f32 = jnp.float32
    H, NH, D = HIDDEN_SIZE, MULTI_HEAD, D_K
    BS = BATCH * SEQ

    def mm(a, b):
        return jnp.dot(a, b, preferred_element_type=f32)

    # ---- unpack the two slabs with static, 8-aligned slices (free views) ----
    q2 = data_ref[0:BS, :]                      # (BS, H)
    k2 = data_ref[BS:2 * BS, :]
    v2 = data_ref[2 * BS:3 * BS, :]
    bias = data_ref[3 * BS:4 * BS, 0:BS]        # (BS, BS) additive mask bias

    wqT = w_ref[_OFF_WQ:_OFF_WQ + H, :]
    wkT = w_ref[_OFF_WK:_OFF_WK + H, :]
    wvT = w_ref[_OFF_WV:_OFF_WV + H, :]
    wxT = w_ref[_OFF_WX:_OFF_WX + H, :]
    wyT = w_ref[_OFF_WY:_OFF_WY + H, :]
    wgT = w_ref[_OFF_WG:_OFF_WG + H, :]
    ek = w_ref[_OFF_EK:_OFF_EK + H, :]
    eq = w_ref[_OFF_EQ:_OFF_EQ + H, :]
    bq = w_ref[_OFF_B + 0:_OFF_B + 1, :]
    bk = w_ref[_OFF_B + 1:_OFF_B + 2, :]
    bv = w_ref[_OFF_B + 2:_OFF_B + 3, :]
    bm = w_ref[_OFF_B + 3:_OFF_B + 4, :]
    bx = w_ref[_OFF_B + 4:_OFF_B + 5, :]
    by = w_ref[_OFF_B + 5:_OFF_B + 6, :]
    bg = w_ref[_OFF_B + 6:_OFF_B + 7, :]

    # ---- Q/K/V projections for both batches at once (PyTorch: x @ W^T + b) ----
    qp = mm(q2, wqT) + bq
    kp = mm(k2, wkT) + bk
    vp = mm(v2, wvT) + bv

    # ---- GatedDotProduct for all heads at once (block-diagonal weights) ----
    gx = mm(kp, wxT) + bx
    gy = mm(qp, wyT) + by
    gate = jax.nn.sigmoid(mm(gx * gy, wgT) + bg)          # (BS, H); cols>=2*NH unused

    kg = mm(gate, ek) * kp                                # k-gated keys
    qg = mm(gate, eq) * qp                                # q-gated queries, * 1/sqrt(D)

    # ---- per-head attention over the combined-batch (BS, BS) score tile ----
    # bias already contains MASK_FILL on cross-batch blocks and masked keys.
    dn = (((1,), (1,)), ((), ()))                         # contract stored last axes
    out_acc = None
    for h in range(NH):
        c = h * D
        qh = qg[:, c:c + D]                               # (BS, D)
        kh = kg[:, c:c + D]
        vh = vp[:, c:c + D]
        s = jax.lax.dot_general(qh, kh, dimension_numbers=dn,
                                preferred_element_type=f32) + bias
        m = jnp.max(s, axis=-1, keepdims=True)
        e = jnp.exp(s - m)
        p = e / jnp.sum(e, axis=-1, keepdims=True)        # exact divide (cheap here)
        oh = mm(p, vh)                                    # (BS, D)
        part = mm(oh, w_ref[_OFF_WM + c:_OFF_WM + c + D, :])   # merge rows of head h
        out_acc = part if out_acc is None else out_acc + part
    out_ref[...] = out_acc + bm                           # single full-width store


# ------------------------------- jitted wrapper --------------------------------
@jax.jit
def mhatt_pallas(v, k, q, mask_bool, w_slab):
    """v, k, q: (B, S, H) f32; mask_bool: (B, 1, 1, S) bool -> (B, S, H)."""
    B, S, H = q.shape
    BS = B * S
    f32 = jnp.float32

    # Additive mask bias (BS, BS): MASK_FILL on cross-batch blocks and on masked
    # key columns; 0 elsewhere.  Padded to lane width H and appended to the data
    # slab so the kernel gets exactly two input DMAs.
    batch_id = jnp.arange(BS, dtype=jnp.int32) // S
    cross = batch_id[:, None] != batch_id[None, :]
    key_masked = mask_bool.reshape(BS)
    masked = cross | key_masked[None, :]
    bias = jnp.where(masked, MASK_FILL, 0.0).astype(f32)
    bias = jnp.pad(bias, ((0, 0), (0, H - BS)))           # requires BS <= H

    data = jnp.concatenate([q.reshape(BS, H).astype(f32),
                            k.reshape(BS, H).astype(f32),
                            v.reshape(BS, H).astype(f32),
                            bias], axis=0)                # (4*BS, H)

    def full_spec(shape):
        nd = len(shape)
        return pl.BlockSpec(shape, lambda i, _nd=nd: (0,) * _nd)

    out2 = pl.pallas_call(
        mhatt_kernel,
        out_shape=jax.ShapeDtypeStruct((BS, H), f32),
        grid_spec=pltpu.PrefetchScalarGridSpec(
            num_scalar_prefetch=0,
            grid=(1,),
            in_specs=[full_spec(tuple(data.shape)), full_spec(tuple(w_slab.shape))],
            out_specs=full_spec((BS, H)),
        ),
        compiler_params=pltpu.CompilerParams(
            dimension_semantics=("arbitrary",)),
    )(data, w_slab)
    return out2.reshape(B, S, H)


# ------------------------------ reference -------------------------------------
def mhatt_reference(v, k, q, mask_bool, params):
    (wq, bq, wk, bk, wv, bv, wx, bx, wy, by, wg, bg, wm, bm) = params
    B, S, H = q.shape

    def lin(x, w, b):
        return x @ w.T + b

    def split_heads(x):
        return x.reshape(B, S, MULTI_HEAD, D_K).transpose(0, 2, 1, 3)

    vh = split_heads(lin(v, wv, bv))
    kh = split_heads(lin(k, wk, bk))
    qh = split_heads(lin(q, wq, bq))

    gate = jax.nn.sigmoid(lin(lin(kh, wx, bx) * lin(qh, wy, by), wg, bg))
    kh = gate[..., 0:1] * kh
    qh = gate[..., 1:2] * qh

    scores = jnp.einsum("bhqd,bhkd->bhqk", qh, kh) / math.sqrt(D_K)
    scores = jnp.where(mask_bool, MASK_FILL, scores)
    att = jax.nn.softmax(scores, axis=-1)
    atted = jnp.einsum("bhqk,bhkd->bhqd", att, vh)
    atted = atted.transpose(0, 2, 1, 3).reshape(B, S, H)
    return lin(atted, wm, bm)


# -------------------------------- main -----------------------------------------
def make_params(key):
    keys = jax.random.split(key, 14)

    def w(k_, shape, fan_in):
        bound = 1.0 / math.sqrt(fan_in)
        return jax.random.uniform(k_, shape, jnp.float32, -bound, bound)

    H, D = HIDDEN_SIZE, D_K
    wq = w(keys[0], (H, H), H); bq = w(keys[1], (1, H), H)
    wk = w(keys[2], (H, H), H); bk = w(keys[3], (1, H), H)
    wv = w(keys[4], (H, H), H); bv = w(keys[5], (1, H), H)
    wx = w(keys[6], (D, D), D); bx = w(keys[7], (1, D), D)
    wy = w(keys[8], (D, D), D); by = w(keys[9], (1, D), D)
    wg = w(keys[10], (2, D), D); bg = w(keys[11], (1, 2), D)
    wm = w(keys[12], (H, H), H); bm = w(keys[13], (1, H), H)
    return (wq, bq, wk, bk, wv, bv, wx, bx, wy, by, wg, bg, wm, bm)


if __name__ == "__main__":
    key = jax.random.PRNGKey(0)
    kp, kq, kk, kv = jax.random.split(key, 4)

    params = make_params(kp)
    q = jax.random.normal(kq, (BATCH, SEQ, HIDDEN_SIZE), jnp.float32)
    k = jax.random.normal(kk, (BATCH, SEQ, HIDDEN_SIZE), jnp.float32)
    v = jax.random.normal(kv, (BATCH, SEQ, HIDDEN_SIZE), jnp.float32)

    # Mask out the last two key positions of batch 1 (True = masked).
    mask = jnp.zeros((BATCH, 1, 1, SEQ), dtype=bool)
    mask = mask.at[1, 0, 0, -2:].set(True)

    # One-time packing of all constants (outside the per-call hot path).
    w_slab = pack_mhatt_weights(params)

    out = mhatt_pallas(v, k, q, mask, w_slab)
    out = jax.block_until_ready(out)

    ref = mhatt_reference(v, k, q, mask, params)
    assert jnp.allclose(out, ref, atol=1e-4, rtol=1e-4), (
        float(jnp.max(jnp.abs(out - ref))))

    print("KERNEL_OK")
</pallas_src>

<mosaic_0001>
module attributes {stable_mosaic.version = 11 : i64} {
  func.func @mhatt_kernel(%arg0: i32, %arg1: memref<64x32xf32, #tpu.memory_space<vmem>>, %arg2: memref<296x32xf32, #tpu.memory_space<vmem>>, %arg3: memref<16x32xf32, #tpu.memory_space<vmem>>) attributes {dimension_semantics = [#tpu.dimension_semantics<arbitrary>], iteration_bounds = array<i64: 1>, scalar_prefetch = 0 : i64, scratch_operands = 0 : i64, tpu.core_type = #tpu.core_type<tc>, window_params = [{pipeline_mode = #tpu.pipeline_mode<synchronous>, transform_indices = @transform_0, window_bounds = array<i64: 64, 32>}, {pipeline_mode = #tpu.pipeline_mode<synchronous>, transform_indices = @transform_1, window_bounds = array<i64: 296, 32>}, {pipeline_mode = #tpu.pipeline_mode<synchronous>, transform_indices = @transform_2, window_bounds = array<i64: 16, 32>}]} {
    %c0 = arith.constant 0 : index
    %c0_0 = arith.constant 0 : index
    %0 = vector.load %arg1[%c0, %c0_0] : memref<64x32xf32, #tpu.memory_space<vmem>>, vector<16x32xf32>
    %c16 = arith.constant 16 : index
    %c0_1 = arith.constant 0 : index
    %1 = vector.load %arg1[%c16, %c0_1] : memref<64x32xf32, #tpu.memory_space<vmem>>, vector<16x32xf32>
    %c32 = arith.constant 32 : index
    %c0_2 = arith.constant 0 : index
    %2 = vector.load %arg1[%c32, %c0_2] : memref<64x32xf32, #tpu.memory_space<vmem>>, vector<16x32xf32>
    %c48 = arith.constant 48 : index
    %c0_3 = arith.constant 0 : index
    %3 = vector.load %arg1[%c48, %c0_3] : memref<64x32xf32, #tpu.memory_space<vmem>>, vector<16x16xf32>
    %c0_4 = arith.constant 0 : index
    %c0_5 = arith.constant 0 : index
    %4 = vector.load %arg2[%c0_4, %c0_5] : memref<296x32xf32, #tpu.memory_space<vmem>>, vector<32x32xf32>
    %c32_6 = arith.constant 32 : index
    %c0_7 = arith.constant 0 : index
    %5 = vector.load %arg2[%c32_6, %c0_7] : memref<296x32xf32, #tpu.memory_space<vmem>>, vector<32x32xf32>
    %c64 = arith.constant 64 : index
    %c0_8 = arith.constant 0 : index
    %6 = vector.load %arg2[%c64, %c0_8] : memref<296x32xf32, #tpu.memory_space<vmem>>, vector<32x32xf32>
    %c128 = arith.constant 128 : index
    %c0_9 = arith.constant 0 : index
    %7 = vector.load %arg2[%c128, %c0_9] : memref<296x32xf32, #tpu.memory_space<vmem>>, vector<32x32xf32>
    %c160 = arith.constant 160 : index
    %c0_10 = arith.constant 0 : index
    %8 = vector.load %arg2[%c160, %c0_10] : memref<296x32xf32, #tpu.memory_space<vmem>>, vector<32x32xf32>
    %c192 = arith.constant 192 : index
    %c0_11 = arith.constant 0 : index
    %9 = vector.load %arg2[%c192, %c0_11] : memref<296x32xf32, #tpu.memory_space<vmem>>, vector<32x32xf32>
    %c224 = arith.constant 224 : index
    %c0_12 = arith.constant 0 : index
    %10 = vector.load %arg2[%c224, %c0_12] : memref<296x32xf32, #tpu.memory_space<vmem>>, vector<32x32xf32>
    %c256 = arith.constant 256 : index
    %c0_13 = arith.constant 0 : index
    %11 = vector.load %arg2[%c256, %c0_13] : memref<296x32xf32, #tpu.memory_space<vmem>>, vector<32x32xf32>
    %c288 = arith.constant 288 : index
    %c0_14 = arith.constant 0 : index
    %12 = vector.load %arg2[%c288, %c0_14] : memref<296x32xf32, #tpu.memory_space<vmem>>, vector<1x32xf32>
    %c289 = arith.constant 289 : index
    %c0_15 = arith.constant 0 : index
    %13 = vector.load %arg2[%c289, %c0_15] : memref<296x32xf32, #tpu.memory_space<vmem>>, vector<1x32xf32>
    %c290 = arith.constant 290 : index
    %c0_16 = arith.constant 0 : index
    %14 = vector.load %arg2[%c290, %c0_16] : memref<296x32xf32, #tpu.memory_space<vmem>>, vector<1x32xf32>
    %c291 = arith.constant 291 : index
    %c0_17 = arith.constant 0 : index
    %15 = vector.load %arg2[%c291, %c0_17] : memref<296x32xf32, #tpu.memory_space<vmem>>, vector<1x32xf32>
    %c292 = arith.constant 292 : index
    %c0_18 = arith.constant 0 : index
    %16 = vector.load %arg2[%c292, %c0_18] : memref<296x32xf32, #tpu.memory_space<vmem>>, vector<1x32xf32>
    %c293 = arith.constant 293 : index
    %c0_19 = arith.constant 0 : index
    %17 = vector.load %arg2[%c293, %c0_19] : memref<296x32xf32, #tpu.memory_space<vmem>>, vector<1x32xf32>
    %c294 = arith.constant 294 : index
    %c0_20 = arith.constant 0 : index
    %18 = vector.load %arg2[%c294, %c0_20] : memref<296x32xf32, #tpu.memory_space<vmem>>, vector<1x32xf32>
    %cst = arith.constant dense<0.000000e+00> : vector<16x32xf32>
    %19 = tpu.matmul %0, %4, %cst {dimension_numbers = #tpu.dot_dimension_numbers<[1], [0], [0], [1], [0, 0, 1, 1], [], []>} : vector<16x32xf32>, vector<32x32xf32>, vector<16x32xf32> -> vector<16x32xf32>
    %20 = vector.broadcast %12 : vector<1x32xf32> to vector<16x32xf32>
    %21 = arith.addf %19, %20 : vector<16x32xf32>
    %cst_21 = arith.constant dense<0.000000e+00> : vector<16x32xf32>
    %22 = tpu.matmul %1, %5, %cst_21 {dimension_numbers = #tpu.dot_dimension_numbers<[1], [0], [0], [1], [0, 0, 1, 1], [], []>} : vector<16x32xf32>, vector<32x32xf32>, vector<16x32xf32> -> vector<16x32xf32>
    %23 = vector.broadcast %13 : vector<1x32xf32> to vector<16x32xf32>
    %24 = arith.addf %22, %23 : vector<16x32xf32>
    %cst_22 = arith.constant dense<0.000000e+00> : vector<16x32xf32>
    %25 = tpu.matmul %2, %6, %cst_22 {dimension_numbers = #tpu.dot_dimension_numbers<[1], [0], [0], [1], [0, 0, 1, 1], [], []>} : vector<16x32xf32>, vector<32x32xf32>, vector<16x32xf32> -> vector<16x32xf32>
    %26 = vector.broadcast %14 : vector<1x32xf32> to vector<16x32xf32>
    %27 = arith.addf %25, %26 : vector<16x32xf32>
    %cst_23 = arith.constant dense<0.000000e+00> : vector<16x32xf32>
    %28 = tpu.matmul %24, %7, %cst_23 {dimension_numbers = #tpu.dot_dimension_numbers<[1], [0], [0], [1], [0, 0, 1, 1], [], []>} : vector<16x32xf32>, vector<32x32xf32>, vector<16x32xf32> -> vector<16x32xf32>
    %29 = vector.broadcast %16 : vector<1x32xf32> to vector<16x32xf32>
    %30 = arith.addf %28, %29 : vector<16x32xf32>
    %cst_24 = arith.constant dense<0.000000e+00> : vector<16x32xf32>
    %31 = tpu.matmul %21, %8, %cst_24 {dimension_numbers = #tpu.dot_dimension_numbers<[1], [0], [0], [1], [0, 0, 1, 1], [], []>} : vector<16x32xf32>, vector<32x32xf32>, vector<16x32xf32> -> vector<16x32xf32>
    %32 = vector.broadcast %17 : vector<1x32xf32> to vector<16x32xf32>
    %33 = arith.addf %31, %32 : vector<16x32xf32>
    %34 = arith.mulf %30, %33 : vector<16x32xf32>
    %cst_25 = arith.constant dense<0.000000e+00> : vector<16x32xf32>
    %35 = tpu.matmul %34, %9, %cst_25 {dimension_numbers = #tpu.dot_dimension_numbers<[1], [0], [0], [1], [0, 0, 1, 1], [], []>} : vector<16x32xf32>, vector<32x32xf32>, vector<16x32xf32> -> vector<16x32xf32>
    %36 = vector.broadcast %18 : vector<1x32xf32> to vector<16x32xf32>
    %37 = arith.addf %35, %36 : vector<16x32xf32>
    %38 = arith.negf %37 : vector<16x32xf32>
    %39 = math.exp %38 : vector<16x32xf32>
    %cst_26 = arith.constant 1.000000e+00 : f32
    %40 = vector.broadcast %cst_26 : f32 to vector<16x32xf32>
    %41 = arith.addf %40, %39 : vector<16x32xf32>
    %42 = arith.divf %40, %41 : vector<16x32xf32>
    %cst_27 = arith.constant dense<0.000000e+00> : vector<16x32xf32>
    %43 = tpu.matmul %42, %10, %cst_27 {dimension_numbers = #tpu.dot_dimension_numbers<[1], [0], [0], [1], [0, 0, 1, 1], [], []>} : vector<16x32xf32>, vector<32x32xf32>, vector<16x32xf32> -> vector<16x32xf32>
    %44 = arith.mulf %43, %24 : vector<16x32xf32>
    %cst_28 = arith.constant dense<0.000000e+00> : vector<16x32xf32>
    %45 = tpu.matmul %42, %11, %cst_28 {dimension_numbers = #tpu.dot_dimension_numbers<[1], [0], [0], [1], [0, 0, 1, 1], [], []>} : vector<16x32xf32>, vector<32x32xf32>, vector<16x32xf32> -> vector<16x32xf32>
    %46 = arith.mulf %45, %21 : vector<16x32xf32>
    %47 = vector.extract_strided_slice %46 {offsets = [0, 0], sizes = [16, 8], strides = [1, 1]} : vector<16x32xf32> to vector<16x8xf32>
    %48 = vector.extract_strided_slice %44 {offsets = [0, 0], sizes = [16, 8], strides = [1, 1]} : vector<16x32xf32> to vector<16x8xf32>
    %49 = vector.extract_strided_slice %27 {offsets = [0, 0], sizes = [16, 8], strides = [1, 1]} : vector<16x32xf32> to vector<16x8xf32>
    %cst_29 = arith.constant dense<0.000000e+00> : vector<16x16xf32>
    %50 = tpu.matmul %47, %48, %cst_29 {dimension_numbers = #tpu.dot_dimension_numbers<[1], [1], [0], [0], [0, 0, 1, 0], [], []>} : vector<16x8xf32>, vector<16x8xf32>, vector<16x16xf32> -> vector<16x16xf32>
    %51 = arith.addf %50, %3 : vector<16x16xf32>
    %cst_30 = arith.constant dense<0xFF800000> : vector<16xf32>
    %52 = vector.multi_reduction <maximumf>, %51, %cst_30 [1] : vector<16x16xf32> to vector<16xf32>
    %53 = vector.shape_cast %52 : vector<16xf32> to vector<16x1xf32>
    %54 = vector.broadcast %53 : vector<16x1xf32> to vector<16x16xf32>
    %55 = arith.subf %51, %54 : vector<16x16xf32>
    %56 = math.exp %55 : vector<16x16xf32>
    %cst_31 = arith.constant dense<0.000000e+00> : vector<16xf32>
    %57 = vector.multi_reduction <add>, %56, %cst_31 [1] : vector<16x16xf32> to vector<16xf32>
    %58 = vector.shape_cast %57 : vector<16xf32> to vector<16x1xf32>
    %59 = vector.broadcast %58 : vector<16x1xf32> to vector<16x16xf32>
    %60 = arith.divf %56, %59 : vector<16x16xf32>
    %cst_32 = arith.constant dense<0.000000e+00> : vector<16x8xf32>
    %61 = tpu.matmul %60, %49, %cst_32 {dimension_numbers = #tpu.dot_dimension_numbers<[1], [0], [0], [1], [0, 0, 1, 1], [], []>} : vector<16x16xf32>, vector<16x8xf32>, vector<16x8xf32> -> vector<16x8xf32>
    %c96 = arith.constant 96 : index
    %c0_33 = arith.constant 0 : index
    %62 = vector.load %arg2[%c96, %c0_33] : memref<296x32xf32, #tpu.memory_space<vmem>>, vector<8x32xf32>
    %cst_34 = arith.constant dense<0.000000e+00> : vector<16x32xf32>
    %63 = tpu.matmul %61, %62, %cst_34 {dimension_numbers = #tpu.dot_dimension_numbers<[1], [0], [0], [1], [0, 0, 1, 1], [], []>} : vector<16x8xf32>, vector<8x32xf32>, vector<16x32xf32> -> vector<16x32xf32>
    %64 = vector.extract_strided_slice %46 {offsets = [0, 8], sizes = [16, 8], strides = [1, 1]} : vector<16x32xf32> to vector<16x8xf32>
    %65 = vector.extract_strided_slice %44 {offsets = [0, 8], sizes = [16, 8], strides = [1, 1]} : vector<16x32xf32> to vector<16x8xf32>
    %66 = vector.extract_strided_slice %27 {offsets = [0, 8], sizes = [16, 8], strides = [1, 1]} : vector<16x32xf32> to vector<16x8xf32>
    %cst_35 = arith.constant dense<0.000000e+00> : vector<16x16xf32>
    %67 = tpu.matmul %64, %65, %cst_35 {dimension_numbers = #tpu.dot_dimension_numbers<[1], [1], [0], [0], [0, 0, 1, 0], [], []>} : vector<16x8xf32>, vector<16x8xf32>, vector<16x16xf32> -> vector<16x16xf32>
    %68 = arith.addf %67, %3 : vector<16x16xf32>
    %cst_36 = arith.constant dense<0xFF800000> : vector<16xf32>
    %69 = vector.multi_reduction <maximumf>, %68, %cst_36 [1] : vector<16x16xf32> to vector<16xf32>
    %70 = vector.shape_cast %69 : vector<16xf32> to vector<16x1xf32>
    %71 = vector.broadcast %70 : vector<16x1xf32> to vector<16x16xf32>
    %72 = arith.subf %68, %71 : vector<16x16xf32>
    %73 = math.exp %72 : vector<16x16xf32>
    %cst_37 = arith.constant dense<0.000000e+00> : vector<16xf32>
    %74 = vector.multi_reduction <add>, %73, %cst_37 [1] : vector<16x16xf32> to vector<16xf32>
    %75 = vector.shape_cast %74 : vector<16xf32> to vector<16x1xf32>
    %76 = vector.broadcast %75 : vector<16x1xf32> to vector<16x16xf32>
    %77 = arith.divf %73, %76 : vector<16x16xf32>
    %cst_38 = arith.constant dense<0.000000e+00> : vector<16x8xf32>
    %78 = tpu.matmul %77, %66, %cst_38 {dimension_numbers = #tpu.dot_dimension_numbers<[1], [0], [0], [1], [0, 0, 1, 1], [], []>} : vector<16x16xf32>, vector<16x8xf32>, vector<16x8xf32> -> vector<16x8xf32>
    %c104 = arith.constant 104 : index
    %c0_39 = arith.constant 0 : index
    %79 = vector.load %arg2[%c104, %c0_39] : memref<296x32xf32, #tpu.memory_space<vmem>>, vector<8x32xf32>
    %cst_40 = arith.constant dense<0.000000e+00> : vector<16x32xf32>
    %80 = tpu.matmul %78, %79, %cst_40 {dimension_numbers = #tpu.dot_dimension_numbers<[1], [0], [0], [1], [0, 0, 1, 1], [], []>} : vector<16x8xf32>, vector<8x32xf32>, vector<16x32xf32> -> vector<16x32xf32>
    %81 = arith.addf %63, %80 : vector<16x32xf32>
    %82 = vector.extract_strided_slice %46 {offsets = [0, 16], sizes = [16, 8], strides = [1, 1]} : vector<16x32xf32> to vector<16x8xf32>
    %83 = vector.extract_strided_slice %44 {offsets = [0, 16], sizes = [16, 8], strides = [1, 1]} : vector<16x32xf32> to vector<16x8xf32>
    %84 = vector.extract_strided_slice %27 {offsets = [0, 16], sizes = [16, 8], strides = [1, 1]} : vector<16x32xf32> to vector<16x8xf32>
    %cst_41 = arith.constant dense<0.000000e+00> : vector<16x16xf32>
    %85 = tpu.matmul %82, %83, %cst_41 {dimension_numbers = #tpu.dot_dimension_numbers<[1], [1], [0], [0], [0, 0, 1, 0], [], []>} : vector<16x8xf32>, vector<16x8xf32>, vector<16x16xf32> -> vector<16x16xf32>
    %86 = arith.addf %85, %3 : vector<16x16xf32>
    %cst_42 = arith.constant dense<0xFF800000> : vector<16xf32>
    %87 = vector.multi_reduction <maximumf>, %86, %cst_42 [1] : vector<16x16xf32> to vector<16xf32>
    %88 = vector.shape_cast %87 : vector<16xf32> to vector<16x1xf32>
    %89 = vector.broadcast %88 : vector<16x1xf32> to vector<16x16xf32>
    %90 = arith.subf %86, %89 : vector<16x16xf32>
    %91 = math.exp %90 : vector<16x16xf32>
    %cst_43 = arith.constant dense<0.000000e+00> : vector<16xf32>
    %92 = vector.multi_reduction <add>, %91, %cst_43 [1] : vector<16x16xf32> to vector<16xf32>
    %93 = vector.shape_cast %92 : vector<16xf32> to vector<16x1xf32>
    %94 = vector.broadcast %93 : vector<16x1xf32> to vector<16x16xf32>
    %95 = arith.divf %91, %94 : vector<16x16xf32>
    %cst_44 = arith.constant dense<0.000000e+00> : vector<16x8xf32>
    %96 = tpu.matmul %95, %84, %cst_44 {dimension_numbers = #tpu.dot_dimension_numbers<[1], [0], [0], [1], [0, 0, 1, 1], [], []>} : vector<16x16xf32>, vector<16x8xf32>, vector<16x8xf32> -> vector<16x8xf32>
    %c112 = arith.constant 112 : index
    %c0_45 = arith.constant 0 : index
    %97 = vector.load %arg2[%c112, %c0_45] : memref<296x32xf32, #tpu.memory_space<vmem>>, vector<8x32xf32>
    %cst_46 = arith.constant dense<0.000000e+00> : vector<16x32xf32>
    %98 = tpu.matmul %96, %97, %cst_46 {dimension_numbers = #tpu.dot_dimension_numbers<[1], [0], [0], [1], [0, 0, 1, 1], [], []>} : vector<16x8xf32>, vector<8x32xf32>, vector<16x32xf32> -> vector<16x32xf32>
    %99 = arith.addf %81, %98 : vector<16x32xf32>
    %100 = vector.extract_strided_slice %46 {offsets = [0, 24], sizes = [16, 8], strides = [1, 1]} : vector<16x32xf32> to vector<16x8xf32>
    %101 = vector.extract_strided_slice %44 {offsets = [0, 24], sizes = [16, 8], strides = [1, 1]} : vector<16x32xf32> to vector<16x8xf32>
    %102 = vector.extract_strided_slice %27 {offsets = [0, 24], sizes = [16, 8], strides = [1, 1]} : vector<16x32xf32> to vector<16x8xf32>
    %cst_47 = arith.constant dense<0.000000e+00> : vector<16x16xf32>
    %103 = tpu.matmul %100, %101, %cst_47 {dimension_numbers = #tpu.dot_dimension_numbers<[1], [1], [0], [0], [0, 0, 1, 0], [], []>} : vector<16x8xf32>, vector<16x8xf32>, vector<16x16xf32> -> vector<16x16xf32>
    %104 = arith.addf %103, %3 : vector<16x16xf32>
    %cst_48 = arith.constant dense<0xFF800000> : vector<16xf32>
    %105 = vector.multi_reduction <maximumf>, %104, %cst_48 [1] : vector<16x16xf32> to vector<16xf32>
    %106 = vector.shape_cast %105 : vector<16xf32> to vector<16x1xf32>
    %107 = vector.broadcast %106 : vector<16x1xf32> to vector<16x16xf32>
    %108 = arith.subf %104, %107 : vector<16x16xf32>
    %109 = math.exp %108 : vector<16x16xf32>
    %cst_49 = arith.constant dense<0.000000e+00> : vector<16xf32>
    %110 = vector.multi_reduction <add>, %109, %cst_49 [1] : vector<16x16xf32> to vector<16xf32>
    %111 = vector.shape_cast %110 : vector<16xf32> to vector<16x1xf32>
    %112 = vector.broadcast %111 : vector<16x1xf32> to vector<16x16xf32>
    %113 = arith.divf %109, %112 : vector<16x16xf32>
    %cst_50 = arith.constant dense<0.000000e+00> : vector<16x8xf32>
    %114 = tpu.matmul %113, %102, %cst_50 {dimension_numbers = #tpu.dot_dimension_numbers<[1], [0], [0], [1], [0, 0, 1, 1], [], []>} : vector<16x16xf32>, vector<16x8xf32>, vector<16x8xf32> -> vector<16x8xf32>
    %c120 = arith.constant 120 : index
    %c0_51 = arith.constant 0 : index
    %115 = vector.load %arg2[%c120, %c0_51] : memref<296x32xf32, #tpu.memory_space<vmem>>, vector<8x32xf32>
    %cst_52 = arith.constant dense<0.000000e+00> : vector<16x32xf32>
    %116 = tpu.matmul %114, %115, %cst_52 {dimension_numbers = #tpu.dot_dimension_numbers<[1], [0], [0], [1], [0, 0, 1, 1], [], []>} : vector<16x8xf32>, vector<8x32xf32>, vector<16x32xf32> -> vector<16x32xf32>
    %117 = arith.addf %99, %116 : vector<16x32xf32>
    %118 = vector.broadcast %15 : vector<1x32xf32> to vector<16x32xf32>
    %119 = arith.addf %117, %118 : vector<16x32xf32>
    %c0_53 = arith.constant 0 : index
    %c0_54 = arith.constant 0 : index
    %120 = vector.load %arg3[%c0_53, %c0_54] : memref<16x32xf32, #tpu.memory_space<vmem>>, vector<16x32xf32>
    tpu.vector_store %arg3[%c0_53, %c0_54], %119 {strides = array<i32>} : memref<16x32xf32, #tpu.memory_space<vmem>>, vector<16x32xf32>,
    return
  }
  func.func @transform_0(%arg0: i32) -> (i32, i32) {
    %c0_i32 = arith.constant 0 : i32
    %c0_i32_0 = arith.constant 0 : i32
    %c0_i32_1 = arith.constant 0 : i32
    return %c0_i32, %c0_i32_0 : i32, i32
  }
  func.func @transform_1(%arg0: i32) -> (i32, i32) {
    %c0_i32 = arith.constant 0 : i32
    %c0_i32_0 = arith.constant 0 : i32
    %c0_i32_1 = arith.constant 0 : i32
    return %c0_i32, %c0_i32_0 : i32, i32
  }
  func.func @transform_2(%arg0: i32) -> (i32, i32) {
    %c0_i32 = arith.constant 0 : i32
    %c0_i32_0 = arith.constant 0 : i32
    %c0_i32_1 = arith.constant 0 : i32
    return %c0_i32, %c0_i32_0 : i32, i32
  }
}

</mosaic_0001>

<bundles_post_ra>
// kernel: mhatt_pallas.1
= control target key start
LH: loop header
LB: loop body
LE: loop exit
PB: predicated region body
PF: predicated region fallthrough
CT: control target
= control target key end

     0   :  { %vm60_vm0 = vcmask 261120   ;;  %s1440_s0 = inlined_call_operand.vmem [shape: f32[64,32], index: 0, kind: input, shape index: {}]   ;;  %s1441_s1 = inlined_call_operand.vmem [shape: f32[296,32], index: 1, kind: input, shape index: {}]   ;;  %s1442_s2 = inlined_call_operand.hbm [shape: f32[16,32], index: 2, kind: output, shape index: {}]  }
   0x1   :  { %v27_v0 = vld [vmem:[%s1441_s1 + $0x38] sm:$0xff]  ;;  %v26_v1 = vld [vmem:[%s1441_s1 + $0x30] sm:$0xff]  ;;  %v25_v3 = vld [vmem:[%s1441_s1 + $0x28] sm:$0xff] }
   0x2   :  { %109 = vmatpush.msra.mxu1 %v27_v0  ;;  %v23_v2 = vld [vmem:[%s1441_s1 + $0x18] sm:$0xff]  ;;  %v24_v4 = vld [vmem:[%s1441_s1 + $0x20] sm:$0xff]  ;;  %v22_v5 = vld [vmem:[%s1441_s1 + $0x10] sm:$0xff] }
   0x3   :  { %79 = vmatpush.msra.mxu0 %v23_v2  ;;  %v14_v6 = vld [vmem:[%s1440_s0 + $0x10] sm:$0xff]  ;;  %v21_v7 = vld [vmem:[%s1441_s1 + $0x8] sm:$0xff]  ;;  %v20_v8 = vld [vmem:[%s1441_s1] sm:$0xff] }
   0x4   :  { %110 = vmatpush.msra.mxu1 %v26_v1  ;;  %v35_v9 = vld [vmem:[%s1441_s1 + $0x98] sm:$0xff]  ;;  %v34_v10 = vld [vmem:[%s1441_s1 + $0x90] sm:$0xff]  ;;  %v12_v11 = vld [vmem:[%s1440_s0] sm:$0xff] }
   0x5   :  { %80 = vmatpush.msra.mxu0 %v22_v5  ;;  %169 = vmatpush.msra.mxu3 %v35_v9 }
   0x6   :  { %111 = vmatpush.msra.mxu1 %v25_v3 }
   0x7   :  { %81 = vmatpush.msra.mxu0 %v21_v7  ;;  %170 = vmatpush.msra.mxu3 %v34_v10 }
   0x8   :  { %112 = vmatpush.msra.mxu1 %v24_v4 }
   0x9   :  { %7 = vsyncpa [#allocation3], 0  ;;  %967 = vmatmul.msk.f32.vlgmr.msra.gmra.mxu1 %vm60_vm0, %v14_v6  ;;  %82 = vmatpush.msra.mxu0 %v20_v8  ;;  %v15_v12 = vld [vmem:[%s1440_s0 + $0x18] sm:$0xff]  ;;  %v13_v13 = vld [vmem:[%s1440_s0 + $0x8] sm:$0xff]  ;;  %vm336_vm9 = vcmask 64512   ;;  %s1109_s13 = smov 120  }
   0xa   :  { %965 = vmatmul.msk.f32.vlgmr.msra.gmra.mxu0 %vm60_vm0, %v12_v11  ;;  %v33_v14 = vld [vmem:[%s1441_s1 + $0x88] sm:$0xff]  ;;  %v32_v15 = vld [vmem:[%s1441_s1 + $0x80] sm:$0xff]  ;;  %v39_v16 = vld [vmem:[%s1441_s1 + $0xb8] sm:$0xff]  ;;  %s1110_s14 = smov 112   ;;  %s1111_s15 = smov 104   ;;  %vm372_vm10 = vcmask 130048  }
   0xb   :  { %171 = vmatpush.msra.mxu3 %v33_v14  ;;  %199 = vmatpush.msrb.mxu0 %v39_v16  ;;  %v38_v17 = vld [vmem:[%s1441_s1 + $0xb0] sm:$0xff]  ;;  %v37_v18 = vld [vmem:[%s1441_s1 + $0xa8] sm:$0xff]  ;;  %v36_v19 = vld [vmem:[%s1441_s1 + $0xa0] sm:$0xff]  ;;  %s1112_s29 = smov [#allocation2]   ;;  %s953_s5 = sshll.u32 %s1442_s2, 4  ;;  %s954_s5 = int_to_ptr.hbm [resolvable:$true] %s953_s5 }
   0xc   :  { %v43_v20 = vld [vmem:[%s1441_s1 + $0xd8] sm:$0xff]  ;;  %v1036_v21 = vld [vmem:[%s1441_s1 + $0x121] ss:$0 sm:$0xff]  ;;  %v1037_v22 = vld [vmem:[%s1441_s1 + $0x120] ss:$0 sm:$0xff]  ;;  %s951_s30 = sshll.u32 %s1112_s29, 4  ;;  %s952_s30 = int_to_ptr.vmem [resolvable:$true] %s951_s30 }
   0xd   :  { %172 = vmatpush.msra.mxu3 %v32_v15  ;;  %200 = vmatpush.msrb.mxu0 %v38_v17  ;;  %v42_v31 = vld [vmem:[%s1441_s1 + $0xd0] sm:$0xff]  ;;  %v41_v32 = vld [vmem:[%s1441_s1 + $0xc8] sm:$0xff]  ;;  %v40_v33 = vld [vmem:[%s1441_s1 + $0xc0] sm:$0xff]  ;;  %s1114_s6 = smov 8  }
   0xe   :  { %231 = vmatpush.msrb.mxu1 %v43_v20  ;;  %v31_v34 = vld [vmem:[%s1441_s1 + $0x58] sm:$0xff]  ;;  %v30_v35 = vld [vmem:[%s1441_s1 + $0x50] sm:$0xff]  ;;  %v1039_v36 = vld [vmem:[%s1441_s1 + $0x125] ss:$0 sm:$0xff] }
   0xf   :  { %201 = vmatpush.msrb.mxu0 %v37_v18  ;;  %139 = vmatpush.msra.mxu2 %v31_v34  ;;  %v1038_v38 = vld [vmem:[%s1441_s1 + $0x124] ss:$0 sm:$0xff]  ;;  %v29_v48 = vld [vmem:[%s1441_s1 + $0x48] sm:$0xff]  ;;  %v47_v52 = vld [vmem:[%s1441_s1 + $0xf8] sm:$0xff] }
  0x10   :  { %232 = vmatpush.msrb.mxu1 %v42_v31  ;;  %v28_v49 = vld [vmem:[%s1441_s1 + $0x40] sm:$0xff]  ;;  %v17_v51 = vld [vmem:[%s1440_s0 + $0x28] sm:$0xff]  ;;  %v51_v53 = vld [vmem:[%s1441_s1 + $0x118] sm:$0xff] }
  0x11   :  { %968 = vmatmul.msk.f32.gmra.mxu1 %vm60_vm0, %v15_v12  ;;  %202 = vmatpush.msrb.mxu0 %v36_v19  ;;  %v16_v50 = vld [vmem:[%s1440_s0 + $0x20] sm:$0xff]  ;;  %v46_v54 = vld [vmem:[%s1441_s1 + $0xf0] sm:$0xff]  ;;  %v45_v56 = vld [vmem:[%s1441_s1 + $0xe8] sm:$0xff] }
  0x12   :  { %966 = vmatmul.msk.f32.gmra.mxu0 %vm60_vm0, %v13_v13  ;;  %233 = vmatpush.msrb.mxu1 %v41_v32  ;;  %v50_v55 = vld [vmem:[%s1441_s1 + $0x110] sm:$0xff]  ;;  %v49_v57 = vld [vmem:[%s1441_s1 + $0x108] sm:$0xff]  ;;  %v44_v58 = vld [vmem:[%s1441_s1 + $0xe0] sm:$0xff] }
  0x13   :  { %140 = vmatpush.msra.mxu2 %v30_v35  ;;  %323 = vmatpush.msrb.mxu3 %v51_v53  ;;  %v48_v59 = vld [vmem:[%s1441_s1 + $0x100] sm:$0xff] }
  0x14   :  { %234 = vmatpush.msrb.mxu1 %v40_v33  ;;  %v1040_v60 = vld [vmem:[%s1441_s1 + $0x126] ss:$0 sm:$0xff]  ;;  %v1041_v32 = vld [vmem:[%s1441_s1 + $0x122] ss:$0 sm:$0xff] }
  0x15   :  { %141 = vmatpush.msra.mxu2 %v29_v48  ;;  %324 = vmatpush.msrb.mxu3 %v50_v55 }
  0x17   :  { %142 = vmatpush.msra.mxu2 %v28_v49  ;;  %325 = vmatpush.msrb.mxu3 %v49_v57 }
  0x18   :  { %969 = vmatmul.msk.f32.vlgmr.msra.gmra.mxu2 %vm60_vm0, %v16_v50  ;;  %v1323_v50 = vld [vmem:[%s1440_s0 + $0x38] sm:$0xff] }
  0x19   :  { %298 = vmatpush.msrb.mxu2 %v47_v52  ;;  %326 = vmatpush.msrb.mxu3 %v48_v59 }
  0x1b   :  { %299 = vmatpush.msrb.mxu2 %v46_v54 }
  0x1d   :  { %300 = vmatpush.msrb.mxu2 %v45_v56 }
  0x1f   :  { %301 = vmatpush.msrb.mxu2 %v44_v58 }
  0x20   :  { %970 = vmatmul.msk.f32.gmra.mxu2 %vm60_vm0, %v17_v51 }
  0x86   :  { %v114_v23 = vpop.f32.mrf.mxu1 }
  0x87   :  { %v1203_v24 = vadd.f32 %v1036_v21, %v114_v23  ;;  %v84_v25 = vpop.f32.mrf.mxu0 }
  0x88   :  { %v1205_v26 = vadd.f32 %v1037_v22, %v84_v25 }
  0x89   :  { %971 = vmatmul.msk.f32.vlgmr.msra.gmra.mxu3 %vm60_vm0, %v1203_v24 }
  0x8a   :  { %973 = vmatmul.msk.f32.vlgmr.msrb.gmra.mxu0 %vm60_vm0, %v1205_v26 }
  0x8e   :  { %v117_v27 = vpop.f32.mrf.mxu1 }
  0x8f   :  { %v1211_v28 = vadd.f32 %v1036_v21, %v117_v27  ;;  %v87_v29 = vpop.f32.mrf.mxu0 }
  0x90   :  { %v1213_v30 = vadd.f32 %v1037_v22, %v87_v29 }
  0x91   :  { %972 = vmatmul.msk.f32.gmra.mxu3 %vm60_vm0, %v1211_v28 }
  0x92   :  { %974 = vmatmul.msk.f32.gmra.mxu0 %vm60_vm0, %v1213_v30 }
  0x9b   :  { %v144_v31 = vpop.f32.mrf.mxu2 }
  0x9c   :  { %v145_v34 = vadd.f32 %v1041_v32, %v144_v31 }
  0xa3   :  { %v147_v33 = vpop.f32.mrf.mxu2 }
  0xa4   :  { %v148_v35 = vadd.f32 %v1041_v32, %v147_v33 }
  0xa6   :  { %441 = vmatpush.msra.mxu1 %v148_v35 }
  0xa8   :  { %442 = vmatpush.msra.mxu1 %v145_v34 }
 0x107   :  { %v204_v37 = vpop.f32.mrf.mxu0 }
 0x108   :  { %v205_v39 = vadd.f32 %v1039_v36, %v204_v37 }
 0x10c   :  { %v174_v40 = vpop.f32.mrf.mxu3 }
 0x10d   :  { %v175_v41 = vadd.f32 %v1038_v38, %v174_v40 }
 0x10f   :  { %v210_v42 = vmul.f32 %v205_v39, %v175_v41  ;;  %v207_v43 = vpop.f32.mrf.mxu0 }
 0x110   :  { %v208_v44 = vadd.f32 %v1039_v36, %v207_v43  ;;  %v1290_v36 = vpack.i.bf16 %v145_v34, %v148_v35 }
 0x111   :  { %975 = vmatmul.msk.f32.vlgmr.msrb.gmra.mxu1 %vm60_vm0, %v210_v42 }
 0x114   :  { %v177_v45 = vpop.f32.mrf.mxu3 }
 0x115   :  { %v178_v46 = vadd.f32 %v1038_v38, %v177_v45 }
 0x117   :  { %v211_v47 = vmul.f32 %v208_v44, %v178_v46  ;;  %v1316_v46 = vld [vmem:[%s1440_s0 + $0x30] sm:$0xff] }
 0x119   :  { %976 = vmatmul.msk.f32.gmra.mxu1 %vm60_vm0, %v211_v47 }
 0x18e   :  { %v236_v61 = vpop.f32.mrf.mxu1 }
 0x18f   :  { %v237_v62 = vadd.f32 %v1040_v60, %v236_v61 }
 0x191   :  { %v977_v63 = vmul.f32 -1.442695, %v237_v62 }
 0x193   :  { %1043 = vpow2.f32 %v977_v63 }
 0x196   :  { %v239_v0 = vpop.f32.mrf.mxu1 }
 0x197   :  { %v240_v1 = vadd.f32 %v1040_v60, %v239_v0 }
 0x199   :  { %v1044_v2 = vpop.eup %1043  ;;  %v978_v3 = vmul.f32 -1.442695, %v240_v1  ;;  %v450_v1 = vld [vmem:[%s1441_s1 + $0x60] sm:$0xff] }
 0x19a   :  { %v248_v4 = vadd.f32 1.0, %v1044_v2  ;;  %626 = vmatpush.msrb.mxu1 %v450_v1 }
 0x19b   :  { %1045 = vpow2.f32 %v978_v3 }
 0x19c   :  { %1047 = vrcp.f32 %v248_v4  ;;  %v261_v10 = vand.u32 2147483648, %v248_v4  ;;  %v259_v12 = vand.u32 2147483647, %v248_v4  ;;  %vm255_vm2 = vweird.f32 %v248_v4 }
 0x19e   :  { %v262_v15 = vor.u32 1.1754944e-38, %v261_v10  ;;  %vm260_vm4 = vcmp.eq.f32.partialorder %v259_v12, 8.507059e+37 }
 0x1a1   :  { %v1046_v5 = vpop.eup %1045 }
 0x1a2   :  { %v1048_v6 = vpop.eup %1047  ;;  %v249_v7 = vadd.f32 1.0, %v1046_v5 }
 0x1a3   :  { %v251_v8 = vmul.f32 %v1048_v6, %v248_v4  ;;  %vm256_vm1 = vweird.f32 %v1048_v6 }
 0x1a4   :  { %1049 = vrcp.f32 %v249_v7  ;;  %vm257_vm3 = vmor %vm255_vm2, %vm256_vm1  ;;  %v276_v20 = vand.u32 2147483648, %v249_v7  ;;  %v274_v22 = vand.u32 2147483647, %v249_v7  ;;  %vm270_vm6 = vweird.f32 %v249_v7 }
 0x1a5   :  { %v252_v9 = vsub.f32 1.0, %v251_v8 }
 0x1a6   :  { %v277_v25 = vor.u32 1.1754944e-38, %v276_v20  ;;  %vm275_vm8 = vcmp.eq.f32.partialorder %v274_v22, 8.507059e+37 }
 0x1a7   :  { %v253_v11 = vmul.f32 %v1048_v6, %v252_v9 }
 0x1a9   :  { %v254_v13 = vadd.f32 %v1048_v6, %v253_v11 }
 0x1aa   :  { %v1050_v14 = vpop.eup %1049 }
 0x1ab   :  { %v258_v16 = vsel %vm257_vm3, %v1048_v6, %v254_v13  ;;  %v266_v17 = vmul.f32 %v1050_v14, %v249_v7  ;;  %vm271_vm5 = vweird.f32 %v1050_v14 }
 0x1ac   :  { %v263_v18 = vsel %vm260_vm4, %v262_v15, %v258_v16  ;;  %vm272_vm7 = vmor %vm270_vm6, %vm271_vm5 }
 0x1ad   :  { %979 = vmatmul.msk.f32.vlgmr.msrb.gmra.mxu2 %vm60_vm0, %v263_v18  ;;  %981 = vmatmul.msk.f32.vlgmr.msrb.gmra.mxu3 %vm60_vm0, %v263_v18  ;;  %v267_v19 = vsub.f32 1.0, %v266_v17 }
 0x1af   :  { %v268_v21 = vmul.f32 %v1050_v14, %v267_v19 }
 0x1b1   :  { %v269_v23 = vadd.f32 %v1050_v14, %v268_v21 }
 0x1b3   :  { %v273_v27 = vsel %vm272_vm7, %v1050_v14, %v269_v23 }
 0x1b4   :  { %v278_v29 = vsel %vm275_vm8, %v277_v25, %v273_v27 }
 0x1b5   :  { %980 = vmatmul.msk.f32.gmra.mxu2 %vm60_vm0, %v278_v29  ;;  %982 = vmatmul.msk.f32.gmra.mxu3 %vm60_vm0, %v278_v29 }
 0x230   :  { %v303_v37 = vpop.f32.mrf.mxu2  ;;  %v328_v40 = vpop.f32.mrf.mxu3 }
 0x231   :  { %v309_v41 = vmul.f32 %v303_v37, %v1203_v24  ;;  %v334_v42 = vmul.f32 %v328_v40, %v1205_v26 }
 0x238   :  { %v306_v38 = vpop.f32.mrf.mxu2  ;;  %v331_v43 = vpop.f32.mrf.mxu3 }
 0x239   :  { %v310_v39 = vmul.f32 %v306_v38, %v1211_v28  ;;  %v335_v44 = vmul.f32 %v331_v43, %v1213_v30 }
 0x23b   :  { %457 = vrot.lane.b32.xlu2 %v310_v39, %s1109_s13  ;;  %983 = vmatpush.xpose.msk.msra.mxu0 %vm336_vm9, %v310_v39 }
 0x23f   :  { %984 = vmatpush.xpose.msk.msra.mxu0 %vm336_vm9, %v309_v41 }
 0x242   :  { %985 = vmatmul.msk.f32.vlgmr.msra.gmra.mxu0 %vm336_vm9, %v334_v42 }
 0x243   :  { %455 = vrot.lane.b32.xlu2 %v309_v41, %s1109_s13 }
 0x24a   :  { %986 = vmatmul.msk.f32.gmra.mxu0 %vm336_vm9, %v335_v44 }
 0x24b   :  { %640 = vrot.lane.b32.xlu2 %v310_v39, %s1110_s14 }
 0x253   :  { %794 = vrot.lane.b32.xlu2 %v310_v39, %s1111_s15 }
 0x25b   :  { %638 = vrot.lane.b32.xlu2 %v309_v41, %s1110_s14 }
 0x263   :  { %634 = vrot.lane.b32.xlu2 %v334_v42, %s1110_s14 }
 0x26b   :  { %790 = vrot.lane.b32.xlu2 %v335_v44, %s1111_s15 }
 0x295   :  { %v458_v24 = vpop.permute.xlu2 %457 }
 0x296   :  { %989 = vmatpush.xpose.msk.msra.mxu2 %vm336_vm9, %v458_v24 }
 0x29d   :  { %v456_v26 = vpop.permute.xlu2 %455 }
 0x29e   :  { %990 = vmatpush.xpose.msk.msra.mxu2 %vm336_vm9, %v456_v26 }
 0x2a5   :  { %v641_v28 = vpop.permute.xlu2 %640 }
 0x2a6   :  { %999 = vmatpush.xpose.msk.msrb.mxu2 %vm336_vm9, %v641_v28 }
 0x2ad   :  { %v1310_v30 = vpop.permute.xlu2 %794 }
 0x2b5   :  { %v639_v45 = vpop.permute.xlu2 %638 }
 0x2b6   :  { %1000 = vmatpush.xpose.msk.msrb.mxu2 %vm336_vm9, %v639_v45 }
 0x2bd   :  { %v635_v35 = vpop.permute.xlu2 %634 }
 0x2bf   :  { %v366_v47 = vpop.f32.mrf.mxu0 }
 0x2c0   :  { %v367_v48 = vadd.f32 %v366_v47, %v1316_v46 }
 0x2c2   :  { %v373_v49 = vsel %vm372_vm10, %v367_v48, -inf }
 0x2c3   :  { %374 = vmax.xlane.f32.xlu0 %v373_v49 }
 0x2c5   :  { %v791_v26 = vpop.permute.xlu2 %790 }
 0x2c7   :  { %v369_v51 = vpop.f32.mrf.mxu0 }
 0x2c8   :  { %v370_v52 = vadd.f32 %v369_v51, %v1323_v50 }
 0x2ca   :  { %v376_v53 = vsel %vm372_vm10, %v370_v52, -inf }
 0x2cb   :  { %377 = vmax.xlane.f32.xlu0 %v376_v53 }
 0x2df   :  { %451 = vrot.lane.b32.xlu0 %v334_v42, %s1109_s13 }
 0x2e7   :  { %792 = vrot.lane.b32.xlu0 %v309_v41, %s1111_s15 }
 0x2ef   :  { %636 = vrot.lane.b32.xlu0 %v335_v44, %s1110_s14 }
 0x336   :  { %v375_v54 = vpop.xlane.xlu0 %374 }
 0x337   :  { %v379_v55 = vsub.f32 %v367_v48, %v375_v54 }
 0x339   :  { %v381_v56 = vmul.f32 1.442695, %v379_v55 }
 0x33b   :  { %1051 = vpow2.f32 %v381_v56 }
 0x33e   :  { %v378_v57 = vpop.xlane.xlu0 %377 }
 0x33f   :  { %v380_v58 = vsub.f32 %v370_v52, %v378_v57 }
 0x341   :  { %v1052_v59 = vpop.eup %1051  ;;  %v383_v60 = vmul.f32 1.442695, %v380_v58 }
 0x342   :  { %v385_v61 = vsel %vm372_vm10, %v1052_v59, 0.0 }
 0x343   :  { %1053 = vpow2.f32 %v383_v60  ;;  %386 = vadd.xlane.f32.xlu1 %v385_v61 }
 0x349   :  { %v1054_v62 = vpop.eup %1053 }
 0x34a   :  { %v388_v63 = vsel %vm372_vm10, %v1054_v62, 0.0 }
 0x34b   :  { %389 = vadd.xlane.f32.xlu1 %v388_v63 }
 0x351   :  { %v452_v0 = vpop.permute.xlu0 %451 }
 0x352   :  { %991 = vmatmul.msk.f32.vlgmr.msra.gmra.mxu2 %vm336_vm9, %v452_v0 }
 0x359   :  { %v793_v23 = vpop.permute.xlu0 %792 }
 0x361   :  { %v637_v37 = vpop.permute.xlu0 %636 }
 0x364   :  { %453 = vrot.lane.b32.xlu1 %v335_v44, %s1109_s13 }
 0x36c   :  { %788 = vrot.lane.b32.xlu1 %v334_v42, %s1111_s15 }
 0x3b6   :  { %v387_v2 = vpop.xlane.xlu1 %386 }
 0x3b7   :  { %1055 = vrcp.f32 %v387_v2  ;;  %v402_v7 = vand.u32 2147483648, %v387_v2  ;;  %v400_v9 = vand.u32 2147483647, %v387_v2  ;;  %vm396_vm12 = vweird.f32 %v387_v2 }
 0x3b9   :  { %v403_v12 = vor.u32 1.1754944e-38, %v402_v7  ;;  %vm401_vm14 = vcmp.eq.f32.partialorder %v400_v9, 8.507059e+37 }
 0x3bd   :  { %v1056_v3 = vpop.eup %1055 }
 0x3be   :  { %v392_v4 = vmul.f32 %v1056_v3, %v387_v2  ;;  %v390_v5 = vpop.xlane.xlu1 %389  ;;  %vm397_vm11 = vweird.f32 %v1056_v3 }
 0x3bf   :  { %1057 = vrcp.f32 %v390_v5  ;;  %vm398_vm13 = vmor %vm396_vm12, %vm397_vm11  ;;  %v417_v18 = vand.u32 2147483648, %v390_v5  ;;  %v415_v20 = vand.u32 2147483647, %v390_v5  ;;  %vm411_vm1 = vweird.f32 %v390_v5 }
 0x3c0   :  { %v393_v6 = vsub.f32 1.0, %v392_v4 }
 0x3c1   :  { %v418_v22 = vor.u32 1.1754944e-38, %v417_v18  ;;  %vm416_vm3 = vcmp.eq.f32.partialorder %v415_v20, 8.507059e+37 }
 0x3c2   :  { %v394_v8 = vmul.f32 %v1056_v3, %v393_v6 }
 0x3c4   :  { %v395_v10 = vadd.f32 %v1056_v3, %v394_v8 }
 0x3c5   :  { %v1058_v11 = vpop.eup %1057 }
 0x3c6   :  { %v399_v13 = vsel %vm398_vm13, %v1056_v3, %v395_v10  ;;  %v407_v14 = vmul.f32 %v1058_v11, %v390_v5  ;;  %vm412_vm15 = vweird.f32 %v1058_v11 }
 0x3c7   :  { %v404_v15 = vsel %vm401_vm14, %v403_v12, %v399_v13  ;;  %vm413_vm2 = vmor %vm411_vm1, %vm412_vm15 }
 0x3c8   :  { %v408_v16 = vsub.f32 1.0, %v407_v14  ;;  %v405_v17 = vmul.f32 %v1052_v59, %v404_v15 }
 0x3ca   :  { %v409_v19 = vmul.f32 %v1058_v11, %v408_v16  ;;  %987 = vmatmul.msk.f32.vlgmr.msra.gmra.mxu1 %vm372_vm10, %v405_v17 }
 0x3cb   :  { %1007 = vmatpush.xpose.msk.msra.mxu1 %vm336_vm9, %v1310_v30 }
 0x3cc   :  { %v410_v21 = vadd.f32 %v1058_v11, %v409_v19 }
 0x3ce   :  { %v414_v25 = vsel %vm413_vm2, %v1058_v11, %v410_v21 }
 0x3cf   :  { %1008 = vmatpush.xpose.msk.msra.mxu1 %vm336_vm9, %v793_v23  ;;  %v419_v27 = vsel %vm416_vm3, %v418_v22, %v414_v25 }
 0x3d0   :  { %v420_v29 = vmul.f32 %v1054_v62, %v419_v27 }
 0x3d2   :  { %988 = vmatmul.msk.f32.gmra.mxu1 %vm372_vm10, %v420_v29 }
 0x3d5   :  { %v484_v31 = vpop.f32.mrf.mxu2 }
 0x3d6   :  { %v485_v32 = vadd.f32 %v484_v31, %v1316_v46  ;;  %v454_v33 = vpop.permute.xlu1 %453 }
 0x3d7   :  { %992 = vmatmul.msk.f32.gmra.mxu2 %vm336_vm9, %v454_v33 }
 0x3d8   :  { %v490_v34 = vsel %vm372_vm10, %v485_v32, -inf }
 0x3d9   :  { %491 = vmax.xlane.f32.xlu1 %v490_v34 }
 0x3de   :  { %v789_v40 = vpop.permute.xlu1 %788 }
 0x3df   :  { %1001 = vmatmul.msk.f32.vlgmr.msrb.gmra.mxu2 %vm336_vm9, %v635_v35 }
 0x3e7   :  { %1002 = vmatmul.msk.f32.gmra.mxu2 %vm336_vm9, %v637_v37 }
 0x447   :  { %v444_v38 = vpop.f32.mrf.mxu1 }
 0x448   :  { %997 = vmatmul.msk.f32.vlgmr.msrb.gmra.mxu1 %vm336_vm9, %v444_v38 }
 0x44c   :  { %v492_v41 = vpop.xlane.xlu1 %491 }
 0x44d   :  { %v496_v44 = vsub.f32 %v485_v32, %v492_v41 }
 0x44f   :  { %v447_v39 = vpop.f32.mrf.mxu1  ;;  %v498_v28 = vmul.f32 1.442695, %v496_v44 }
 0x450   :  { %998 = vmatmul.msk.f32.gmra.mxu1 %vm336_vm9, %v447_v39 }
 0x451   :  { %1059 = vpow2.f32 %v498_v28 }
 0x457   :  { %v1356_v48 = vpop.eup %1059 }
 0x458   :  { %1009 = vmatmul.msk.f32.vlgmr.msra.gmra.mxu1 %vm336_vm9, %v789_v40  ;;  %v502_v49 = vsel %vm372_vm10, %v1356_v48, 0.0 }
 0x45a   :  { %v487_v42 = vpop.f32.mrf.mxu2 }
 0x45b   :  { %v488_v43 = vadd.f32 %v487_v42, %v1323_v50 }
 0x45d   :  { %v493_v24 = vsel %vm372_vm10, %v488_v43, -inf }
 0x45e   :  { %494 = vmax.xlane.f32.xlu0 %v493_v24 }
 0x460   :  { %1010 = vmatmul.msk.f32.gmra.mxu1 %vm336_vm9, %v791_v26 }
 0x462   :  { %v667_v30 = vpop.f32.mrf.mxu2 }
 0x463   :  { %v668_v45 = vadd.f32 %v667_v30, %v1316_v46 }
 0x465   :  { %v673_v47 = vsel %vm372_vm10, %v668_v45, -inf }
 0x466   :  { %674 = vmax.xlane.f32.xlu1 %v673_v47 }
 0x46a   :  { %v670_v58 = vpop.f32.mrf.mxu2 }
 0x46b   :  { %v671_v62 = vadd.f32 %v670_v58, %v1323_v50 }
 0x46e   :  { %503 = vadd.xlane.f32.xlu1 %v502_v49 }
 0x4c5   :  { %v1360_v51 = vpop.f32.mrf.mxu1 }
 0x4cd   :  { %v1362_v52 = vpop.f32.mrf.mxu1 }
 0x4d1   :  { %v495_v53 = vpop.xlane.xlu0 %494 }
 0x4d2   :  { %v497_v56 = vsub.f32 %v488_v43, %v495_v53 }
 0x4d4   :  { %v500_v61 = vmul.f32 1.442695, %v497_v56 }
 0x4d5   :  { %v821_v54 = vpop.f32.mrf.mxu1 }
 0x4d6   :  { %v822_v55 = vadd.f32 %v821_v54, %v1316_v46  ;;  %v676_v46 = vsel %vm372_vm10, %v671_v62, -inf }
 0x4d8   :  { %v827_v57 = vsel %vm372_vm10, %v822_v55, -inf }
 0x4d9   :  { %v675_v59 = vpop.xlane.xlu1 %674  ;;  %828 = vmax.xlane.f32.xlu2 %v827_v57 }
 0x4da   :  { %v679_v60 = vsub.f32 %v668_v45, %v675_v59 }
 0x4dc   :  { %v681_v63 = vmul.f32 1.442695, %v679_v60 }
 0x4dd   :  { %v824_v0 = vpop.f32.mrf.mxu1 }
 0x4de   :  { %1061 = vpow2.f32 %v681_v63  ;;  %v825_v1 = vadd.f32 %v824_v0, %v1323_v50 }
 0x4df   :  { %1063 = vpow2.f32 %v500_v61 }
 0x4e0   :  { %v830_v2 = vsel %vm372_vm10, %v825_v1, -inf }
 0x4e1   :  { %831 = vmax.xlane.f32.xlu0 %v830_v2  ;;  %677 = vmax.xlane.f32.xlu2 %v676_v46  ;;  %v504_v9 = vpop.xlane.xlu1 %503 }
 0x4e2   :  { %v519_v35 = vand.u32 2147483648, %v504_v9  ;;  %vm513_vm5 = vweird.f32 %v504_v9  ;;  %v517_v37 = vand.u32 2147483647, %v504_v9 }
 0x4e4   :  { %v1370_v3 = vpop.eup %1061  ;;  %v520_v40 = vor.u32 1.1754944e-38, %v519_v35  ;;  %vm518_vm7 = vcmp.eq.f32.partialorder %v517_v37, 8.507059e+37 }
 0x4e5   :  { %v1372_v4 = vpop.eup %1063  ;;  %v685_v5 = vsel %vm372_vm10, %v1370_v3, 0.0 }
 0x4e6   :  { %686 = vadd.xlane.f32.xlu1 %v685_v5  ;;  %v505_v6 = vsel %vm372_vm10, %v1372_v4, 0.0 }
 0x4e9   :  { %506 = vadd.xlane.f32.xlu0 %v505_v6 }
 0x4fd   :  { %1022 = vrot.lane.b32.xlu0 %v1290_v36, %s1109_s13 }
 0x54c   :  { %v829_v50 = vpop.xlane.xlu2 %828 }
 0x54d   :  { %v833_v7 = vsub.f32 %v822_v55, %v829_v50 }
 0x54f   :  { %v835_v8 = vmul.f32 1.442695, %v833_v7 }
 0x551   :  { %1065 = vpow2.f32 %v835_v8 }
 0x552   :  { %1067 = vrcp.f32 %v504_v9 }
 0x554   :  { %v678_v10 = vpop.xlane.xlu2 %677  ;;  %v832_v11 = vpop.xlane.xlu0 %831 }
 0x555   :  { %v680_v12 = vsub.f32 %v671_v62, %v678_v10  ;;  %v834_v13 = vsub.f32 %v825_v1, %v832_v11 }
 0x557   :  { %v1380_v14 = vpop.eup %1065  ;;  %v683_v15 = vmul.f32 1.442695, %v680_v12  ;;  %v837_v16 = vmul.f32 1.442695, %v834_v13 }
 0x558   :  { %v839_v17 = vsel %vm372_vm10, %v1380_v14, 0.0  ;;  %v1068_v18 = vpop.eup %1067 }
 0x559   :  { %1069 = vpow2.f32 %v683_v15  ;;  %840 = vadd.xlane.f32.xlu2 %v839_v17  ;;  %v509_v20 = vmul.f32 %v1068_v18, %v504_v9  ;;  %vm514_vm4 = vweird.f32 %v1068_v18  ;;  %v687_v54 = vpop.xlane.xlu1 %686 }
 0x55a   :  { %1071 = vpow2.f32 %v837_v16  ;;  %vm515_vm6 = vmor %vm513_vm5, %vm514_vm4 }
 0x55b   :  { %v510_v25 = vsub.f32 1.0, %v509_v20 }
 0x55c   :  { %v507_v19 = vpop.xlane.xlu0 %506 }
 0x55d   :  { %1073 = vrcp.f32 %v507_v19  ;;  %v511_v31 = vmul.f32 %v1068_v18, %v510_v25  ;;  %v534_v24 = vand.u32 2147483648, %v507_v19  ;;  %vm528_vm11 = vweird.f32 %v507_v19 }
 0x55e   :  { %v532_v30 = vand.u32 2147483647, %v507_v19 }
 0x55f   :  { %v1384_v21 = vpop.eup %1069  ;;  %v512_v33 = vadd.f32 %v1068_v18, %v511_v31  ;;  %v535_v47 = vor.u32 1.1754944e-38, %v534_v24  ;;  %v702_v31 = vand.u32 2147483648, %v687_v54 }
 0x560   :  { %v1386_v22 = vpop.eup %1071  ;;  %v688_v23 = vsel %vm372_vm10, %v1384_v21, 0.0  ;;  %vm533_vm13 = vcmp.eq.f32.partialorder %v532_v30, 8.507059e+37 }
 0x561   :  { %689 = vadd.xlane.f32.xlu1 %v688_v23  ;;  %v842_v27 = vsel %vm372_vm10, %v1386_v22, 0.0  ;;  %v516_v38 = vsel %vm515_vm6, %v1068_v18, %v512_v33  ;;  %v703_v35 = vor.u32 1.1754944e-38, %v702_v31 }
 0x562   :  { %843 = vadd.xlane.f32.xlu2 %v842_v27  ;;  %v521_v42 = vsel %vm518_vm7, %v520_v40, %v516_v38 }
 0x563   :  { %v1074_v29 = vpop.eup %1073  ;;  %v522_v28 = vmul.f32 %v1356_v48, %v521_v42 }
 0x564   :  { %v524_v32 = vmul.f32 %v1074_v29, %v507_v19  ;;  %vm529_vm8 = vweird.f32 %v1074_v29 }
 0x565   :  { %vm530_vm12 = vmor %vm528_vm11, %vm529_vm8  ;;  %vm696_vm8 = vweird.f32 %v687_v54 }
 0x566   :  { %v525_v34 = vsub.f32 1.0, %v524_v32 }
 0x568   :  { %v526_v39 = vmul.f32 %v1074_v29, %v525_v34 }
 0x56a   :  { %v527_v44 = vadd.f32 %v1074_v29, %v526_v39 }
 0x56c   :  { %v531_v45 = vsel %vm530_vm12, %v1074_v29, %v527_v44 }
 0x56d   :  { %v536_v49 = vsel %vm533_vm13, %v535_v47, %v531_v45  ;;  %v756_v47 = vld [vmem:[%s1441_s1 + $0x70] sm:$0xff] }
 0x56e   :  { %v537_v53 = vmul.f32 %v1372_v4, %v536_v49 }
 0x56f   :  { %v1023_v41 = vpop.permute.xlu0 %1022 }
 0x570   :  { %v1024_v43 = vunpack.i.l.bf16 %v1023_v41  ;;  %v1025_v26 = vunpack.i.h.bf16 %v1023_v41 }
 0x572   :  { %566 = vmatpush.msra.mxu3 %v1024_v43 }
 0x574   :  { %567 = vmatpush.msra.mxu3 %v1025_v26 }
 0x575   :  { %993 = vmatmul.msk.f32.vlgmr.msra.gmra.mxu3 %vm372_vm10, %v522_v28 }
 0x57a   :  { %1027 = vrot.lane.b32.xlu2 %v1290_v36, %s1111_s15  ;;  %1032 = vrot.lane.b32.xlu1 %v1290_v36, %s1110_s14  ;;  %v575_v36 = vld [vmem:[%s1441_s1 + $0x68] sm:$0xff] }
 0x57b   :  { %597 = vmatpush.msrb.mxu0 %v575_v36 }
 0x57d   :  { %994 = vmatmul.msk.f32.gmra.mxu3 %vm372_vm10, %v537_v53  ;;  %778 = vmatpush.msra.mxu0 %v756_v47 }
 0x5cc   :  { %v841_v48 = vpop.xlane.xlu2 %840 }
 0x5cd   :  { %1075 = vrcp.f32 %v841_v48  ;;  %v856_v62 = vand.u32 2147483648, %v841_v48  ;;  %v854_v63 = vand.u32 2147483647, %v841_v48  ;;  %vm850_vm15 = vweird.f32 %v841_v48 }
 0x5ce   :  { %1077 = vrcp.f32 %v687_v54 }
 0x5cf   :  { %v857_v4 = vor.u32 1.1754944e-38, %v856_v62  ;;  %vm855_vm2 = vcmp.eq.f32.partialorder %v854_v63, 8.507059e+37 }
 0x5d3   :  { %v1076_v55 = vpop.eup %1075 }
 0x5d4   :  { %v846_v56 = vmul.f32 %v1076_v55, %v841_v48  ;;  %v1400_v59 = vpop.xlane.xlu1 %689  ;;  %v1078_v60 = vpop.eup %1077  ;;  %vm851_vm14 = vweird.f32 %v1076_v55 }
 0x5d5   :  { %v844_v57 = vpop.xlane.xlu2 %843  ;;  %v692_v0 = vmul.f32 %v1078_v60, %v687_v54  ;;  %vm852_vm1 = vmor %vm850_vm15, %vm851_vm14  ;;  %vm697_vm7 = vweird.f32 %v1078_v60  ;;  %v717_v41 = vand.u32 2147483648, %v1400_v59  ;;  %vm711_vm14 = vweird.f32 %v1400_v59 }
 0x5d6   :  { %v847_v58 = vsub.f32 1.0, %v846_v56  ;;  %1079 = vrcp.f32 %v844_v57  ;;  %v871_v11 = vand.u32 2147483648, %v844_v57  ;;  %v869_v16 = vand.u32 2147483647, %v844_v57  ;;  %vm698_vm11 = vmor %vm696_vm8, %vm697_vm7 }
 0x5d7   :  { %1081 = vrcp.f32 %v1400_v59  ;;  %v693_v50 = vsub.f32 1.0, %v692_v0  ;;  %vm865_vm4 = vweird.f32 %v844_v57  ;;  %v718_v24 = vor.u32 1.1754944e-38, %v717_v41 }
 0x5d8   :  { %v848_v61 = vmul.f32 %v1076_v55, %v847_v58  ;;  %v872_v20 = vor.u32 1.1754944e-38, %v871_v11  ;;  %vm870_vm6 = vcmp.eq.f32.partialorder %v869_v16, 8.507059e+37 }
 0x5d9   :  { %v694_v17 = vmul.f32 %v1078_v60, %v693_v50 }
 0x5da   :  { %v849_v1 = vadd.f32 %v1076_v55, %v848_v61 }
 0x5db   :  { %v695_v25 = vadd.f32 %v1078_v60, %v694_v17 }
 0x5dc   :  { %v1080_v2 = vpop.eup %1079  ;;  %v853_v46 = vsel %vm852_vm1, %v1076_v55, %v849_v1 }
 0x5dd   :  { %v861_v5 = vmul.f32 %v1080_v2, %v844_v57  ;;  %v1028_v6 = vpop.permute.xlu2 %1027  ;;  %v858_v7 = vsel %vm855_vm2, %v857_v4, %v853_v46  ;;  %v1082_v9 = vpop.eup %1081  ;;  %vm866_vm3 = vweird.f32 %v1080_v2  ;;  %v699_v33 = vsel %vm698_vm11, %v1078_v60, %v695_v25  ;;  %v1042_v60 = vld [vmem:[%s1441_s1 + $0x123] ss:$0 sm:$0xff] }
 0x5de   :  { %v1029_v8 = vunpack.i.l.bf16 %v1028_v6  ;;  %v1030_v12 = vunpack.i.h.bf16 %v1028_v6  ;;  %v859_v15 = vmul.f32 %v1380_v14, %v858_v7  ;;  %v707_v18 = vmul.f32 %v1082_v9, %v1400_v59  ;;  %vm867_vm5 = vmor %vm865_vm4, %vm866_vm3 }
 0x5df   :  { %v862_v10 = vsub.f32 1.0, %v861_v5  ;;  %v700_v14 = vand.u32 2147483647, %v687_v54  ;;  %vm712_vm13 = vweird.f32 %v1082_v9 }
 0x5e0   :  { %901 = vmatpush.msra.mxu2 %v1029_v8  ;;  %v708_v27 = vsub.f32 1.0, %v707_v18  ;;  %vm713_vm15 = vmor %vm711_vm14, %vm712_vm13 }
 0x5e1   :  { %v863_v13 = vmul.f32 %v1080_v2, %v862_v10  ;;  %vm701_vm12 = vcmp.eq.f32.partialorder %v700_v14, 8.507059e+37 }
 0x5e2   :  { %902 = vmatpush.msra.mxu2 %v1030_v12  ;;  %v709_v34 = vmul.f32 %v1082_v9, %v708_v27  ;;  %v704_v38 = vsel %vm701_vm12, %v703_v35, %v699_v33 }
 0x5e3   :  { %1011 = vmatmul.msk.f32.vlgmr.msra.gmra.mxu2 %vm372_vm10, %v859_v15  ;;  %v864_v19 = vadd.f32 %v1080_v2, %v863_v13  ;;  %v705_v43 = vmul.f32 %v1370_v3, %v704_v38  ;;  %v910_v3 = vld [vmem:[%s1441_s1 + $0x78] sm:$0xff]  ;;  %s1113_s1 = smov 128  }
 0x5e4   :  { %v710_v40 = vadd.f32 %v1082_v9, %v709_v34 }
 0x5e5   :  { %v868_v23 = vsel %vm867_vm5, %v1080_v2, %v864_v19 }
 0x5e6   :  { %v873_v29 = vsel %vm870_vm6, %v872_v20, %v868_v23  ;;  %v714_v44 = vsel %vm713_vm15, %v1082_v9, %v710_v40 }
 0x5e7   :  { %v874_v32 = vmul.f32 %v1386_v22, %v873_v29  ;;  %v715_v22 = vand.u32 2147483647, %v1400_v59 }
 0x5e9   :  { %vm716_vm1 = vcmp.eq.f32.partialorder %v715_v22, 8.507059e+37 }
 0x5ea   :  { %v719_v26 = vsel %vm716_vm1, %v718_v24, %v714_v44 }
 0x5eb   :  { %1012 = vmatmul.msk.f32.gmra.mxu2 %vm372_vm10, %v874_v32  ;;  %v720_v30 = vmul.f32 %v1384_v21, %v719_v26 }
 0x5ec   :  { %v1033_v37 = vpop.permute.xlu1 %1032 }
 0x5ed   :  { %v1034_v39 = vunpack.i.l.bf16 %v1033_v37  ;;  %v1035_v42 = vunpack.i.h.bf16 %v1033_v37 }
 0x5ef   :  { %747 = vmatpush.msrb.mxu3 %v1034_v39 }
 0x5f1   :  { %748 = vmatpush.msrb.mxu3 %v1035_v42 }
 0x5f2   :  { %1003 = vmatmul.msk.f32.vlgmr.msrb.gmra.mxu3 %vm372_vm10, %v705_v43 }
 0x5f3   :  { %932 = vmatpush.msra.mxu3 %v910_v3 }
 0x5f8   :  { %v569_v28 = vpop.f32.mrf.mxu3 }
 0x5f9   :  { %995 = vmatmul.msk.f32.vlgmr.msrb.gmra.mxu0 %vm336_vm9, %v569_v28 }
 0x5fa   :  { %1004 = vmatmul.msk.f32.gmra.mxu3 %vm372_vm10, %v720_v30 }
 0x600   :  { %v572_v45 = vpop.f32.mrf.mxu3 }
 0x601   :  { %996 = vmatmul.msk.f32.gmra.mxu0 %vm336_vm9, %v572_v45 }
 0x666   :  { %v904_v49 = vpop.f32.mrf.mxu2 }
 0x667   :  { %1013 = vmatmul.msk.f32.vlgmr.msra.gmra.mxu3 %vm336_vm9, %v904_v49 }
 0x66e   :  { %v907_v21 = vpop.f32.mrf.mxu2 }
 0x66f   :  { %1014 = vmatmul.msk.f32.gmra.mxu3 %vm336_vm9, %v907_v21 }
 0x675   :  { %v750_v53 = vpop.f32.mrf.mxu3 }
 0x676   :  { %1005 = vmatmul.msk.f32.vlgmr.msra.gmra.mxu0 %vm336_vm9, %v750_v53  ;;  %v599_v54 = vpop.f32.mrf.mxu0 }
 0x677   :  { %v629_v56 = vadd.f32 %v1360_v51, %v599_v54 }
 0x67d   :  { %v753_v48 = vpop.f32.mrf.mxu3 }
 0x67e   :  { %1006 = vmatmul.msk.f32.gmra.mxu0 %vm336_vm9, %v753_v48  ;;  %v602_v55 = vpop.f32.mrf.mxu0 }
 0x67f   :  { %v632_v36 = vadd.f32 %v1362_v52, %v602_v55 }
 0x6ea   :  { %v934_v57 = vpop.f32.mrf.mxu3 }
 0x6f2   :  { %v937_v51 = vpop.f32.mrf.mxu3 }
 0x6f3   :  { %v780_v58 = vpop.f32.mrf.mxu0 }
 0x6f4   :  { %v786_v59 = vadd.f32 %v780_v58, %v629_v56 }
 0x6f6   :  { %v940_v61 = vadd.f32 %v934_v57, %v786_v59 }
 0x6f8   :  { %v943_v62 = vadd.f32 %v1042_v60, %v940_v61 }
 0x6fa   :  { %945 = vst.msk [vmem:[#allocation2] sm:$0xff] %vm60_vm0, %v943_v62 }
 0x6fb   :  { %v783_v63 = vpop.f32.mrf.mxu0 }
 0x6fc   :  { %v787_v0 = vadd.f32 %v783_v63, %v632_v36 }
 0x6fe   :  { %v941_v1 = vadd.f32 %v937_v51, %v787_v0 }
 0x700   :  { %v944_v2 = vadd.f32 %v1042_v60, %v941_v1 }
 0x702   :  { %946 = vst.msk [vmem:[#allocation2 + $0x8] sm:$0xff] %vm60_vm0, %v944_v2 }
 0x703   :  { %959 = dma.vmem_to_hbm [thread:$0]  %s952_s30, 256, %s954_s5, [#allocation3], %s1113_s1, %s1113_s1, %s1114_s6  }
 0x704   :  { %1107 = dma.done.wait [#allocation3], 256  }
 0x705   :  { %1108 = vsyncadd [#allocation3], 4294967040 }
 0x706   :  { %964 = vsyncpa [#allocation3], 1 }

</bundles_post_ra>
